<compile_context>
chip_gen: v5e
topology: v5e:2x2
jax: 0.10.0
libtpu: 0.0.40
codegen_flags: <defaults>
</compile_context>

<pallas_src>
import jax
import jax.numpy as jnp
import numpy as np
from jax.experimental import pallas as pl
from jax.experimental.pallas import tpu as pltpu

# ---- model config (matches LitePulseDetector with a small synthetic config) ----
BATCH = 2
SEQ = 16        # input sequence length
CIN = 4         # config.MODEL['input_size']
OUT = 2         # config.MODEL['output_size']
C1 = 8          # conv1 out channels
C2 = 16         # conv2 out channels == GRU input size
HID = 16        # GRU hidden size
FC1 = 8         # fc hidden width
K1, K2 = 5, 3   # conv kernel sizes
P1, P2 = 2, 1   # conv paddings
L1P = SEQ // 2  # length after maxpool1
L2P = L1P // 2  # length after maxpool2 (= GRU steps)

# ---- packed-parameter layout: one (PACK_ROWS, 128) lane-dense f32 buffer ----
# Every block starts at a multiple-of-8 row so every in-kernel slice is
# sublane-aligned (static ref views are free).
R_W1 = 0        # (K1*CIN, C1)  conv1 im2col weight  (row = k*CIN + c)
R_W2 = 24       # (K2*C1, C2)   conv2 im2col weight  (row = k*C1  + c)
R_WIH = 48      # (3*HID, C2)   GRU W_ih, PyTorch gate order [r|z|n]
R_WHH = 96      # (3*HID, HID)  GRU W_hh
R_WF1 = 144     # (FC1, HID)    fc1 weight (PyTorch (out,in) orientation)
R_WF2 = 152     # (OUT, FC1)    fc2 weight
R_BCOL = 160    # (3*HID, 4)    col0=b_ih, col1=b_hh, col2[:FC1]=b_fc1, col3[:OUT]=b_fc2
R_BROW = 208    # row0[:C1]=b_conv1, row1[:C2]=b_conv2
PACK_ROWS, PACK_COLS = 216, 128


def _sigmoid(v):
    # tanh form: transcendental goes to the EUP slot, no f32 divide on the
    # recurrent critical path.
    return 0.5 * (jnp.tanh(0.5 * v) + 1.0)


def lite_pulse_kernel(cols1_ref, w_ref, out_ref):
    f32, bf16 = jnp.float32, jnp.bfloat16
    nb = cols1_ref.shape[0] // SEQ              # batch size (static)

    def mm(a, b):
        # bf16 operands -> single-pass MXU; f32 accumulation.
        return jnp.dot(a.astype(bf16), b.astype(bf16), preferred_element_type=f32)

    # ---- carve weights/biases out of the single packed buffer ----
    w1 = w_ref[R_W1:R_W1 + K1 * CIN, 0:C1]
    w2 = w_ref[R_W2:R_W2 + K2 * C1, 0:C2]
    wih = w_ref[R_WIH:R_WIH + 3 * HID, 0:C2]
    whh = w_ref[R_WHH:R_WHH + 3 * HID, 0:HID].astype(bf16)    # reused every GRU step
    wf1 = w_ref[R_WF1:R_WF1 + FC1, 0:HID]
    wf2 = w_ref[R_WF2:R_WF2 + OUT, 0:FC1]
    bcol = w_ref[R_BCOL:R_BCOL + 3 * HID, 0:4]
    bih_c, bhh_c = bcol[:, 0:1], bcol[:, 1:2]                 # (3*HID, 1) columns
    bf1_c, bf2_c = bcol[0:FC1, 2:3], bcol[0:OUT, 3:4]         # (FC1,1), (OUT,1)
    b1_r = w_ref[R_BROW:R_BROW + 1, 0:C1]                     # (1, C1)
    b2_r = w_ref[R_BROW + 1:R_BROW + 2, 0:C2]                 # (1, C2)

    # ---- conv1 (k=5, pad=2): im2col done in the wrapper -> ONE matmul + ReLU ----
    y1 = jnp.maximum(mm(cols1_ref[...], w1) + b1_r, 0.0)      # (SEQ*nb, C1), time-major rows

    # ---- maxpool1 (k=2, s=2 over time): one vectorized pairwise max ----
    y1p = y1.reshape(L1P, 2 * nb, C1)
    pool1 = jnp.maximum(y1p[:, :nb, :], y1p[:, nb:, :]).reshape(L1P * nb, C1)

    # ---- conv2 (k=3, pad=1): zero-pad one time step each side, K2 shifted
    #      views, ONE lane concat, ONE matmul + ReLU ----
    zrow = jnp.zeros((nb, C1), f32)
    p1pad = jnp.concatenate([zrow, pool1, zrow], axis=0)      # ((L1P+2)*nb, C1)
    cols2 = jnp.concatenate(
        [p1pad[k * nb:k * nb + L1P * nb, :] for k in range(K2)], axis=1)  # (L1P*nb, K2*C1)
    y2 = jnp.maximum(mm(cols2, w2) + b2_r, 0.0)               # (L1P*nb, C2), time-major rows

    # ---- maxpool2 ----
    y2p = y2.reshape(L2P, 2 * nb, C2)
    seq = jnp.maximum(y2p[:, :nb, :], y2p[:, nb:, :]).reshape(L2P * nb, C2)

    # ---- GRU (feature-major so r/z/n splits are sublane-aligned) ----
    seq_t = jnp.transpose(seq)                                # (C2, L2P*nb), cols time-major
    xproj = mm(wih, seq_t) + bih_c                            # (3*HID, L2P*nb) hoisted x-side
    xr = xproj[0:HID, :]
    xz = xproj[HID:2 * HID, :]
    xn = xproj[2 * HID:3 * HID, :]

    h = jnp.zeros((HID, nb), f32)
    for t in range(L2P):                                      # 4 steps, static unroll
        lo, hi = t * nb, (t + 1) * nb
        hp = jnp.dot(whh, h.astype(bf16),
                     preferred_element_type=f32) + bhh_c      # ONE matmul / step, (3*HID, nb)
        r = _sigmoid(xr[:, lo:hi] + hp[0:HID, :])             # sublane-aligned gate picks
        z = _sigmoid(xz[:, lo:hi] + hp[HID:2 * HID, :])
        n = jnp.tanh(xn[:, lo:hi] + r * hp[2 * HID:3 * HID, :])
        h = n + z * (h - n)                                   # == (1-z)*n + z*h

    # ---- fc head (feature-major): Linear(16,8)+ReLU+Linear(8,OUT) ----
    z1 = jnp.maximum(mm(wf1, h) + bf1_c, 0.0)                 # (FC1, nb)
    out_ref[...] = (mm(wf2, z1) + bf2_c).astype(out_ref.dtype)  # (OUT, nb)


def _im2col_conv1(x):
    """(B, SEQ, CIN) -> (SEQ*B, K1*CIN), time-major rows (row = t*B + b).

    Pure layout plumbing, so it lives wrapper-side where XLA fuses it into
    input prep instead of becoming in-kernel relayout copies."""
    b = x.shape[0]
    xp = jnp.pad(x.astype(jnp.float32), ((0, 0), (P1, P1), (0, 0)))
    cols = jnp.concatenate([xp[:, k:k + SEQ, :] for k in range(K1)], axis=2)
    return jnp.transpose(cols, (1, 0, 2)).reshape(SEQ * b, K1 * CIN)


@jax.jit
def lite_pulse_detector(x, w_packed):
    b = x.shape[0]
    cols1 = _im2col_conv1(x)
    # Single no-grid invocation (whole problem is a few KB -> fixed-overhead
    # bound).  For large batches, tile the batch with a leading "parallel"
    # grid axis instead so both v7x TensorCores are used; weights stay resident.
    out_t = pl.pallas_call(
        lite_pulse_kernel,
        out_shape=jax.ShapeDtypeStruct((OUT, b), jnp.float32),
        in_specs=[pl.BlockSpec(memory_space=pltpu.MemorySpace.VMEM),
                  pl.BlockSpec(memory_space=pltpu.MemorySpace.VMEM)],
        out_specs=pl.BlockSpec(memory_space=pltpu.MemorySpace.VMEM),
    )(cols1, w_packed)
    # Kernel works feature-major; the tiny (OUT, B) -> (B, OUT) flip is free here.
    return out_t.T


def pack_params(c1w, c1b, c2w, c2b, Wih, Whh, bih, bhh, f1w, f1b, f2w, f2b):
    """Pack all parameters (PyTorch layouts) into one lane-dense VMEM buffer."""
    W = np.zeros((PACK_ROWS, PACK_COLS), np.float32)
    # conv weights -> im2col layout: row = k*Cin + c, col = out channel
    W[R_W1:R_W1 + K1 * CIN, :C1] = np.transpose(np.asarray(c1w), (2, 1, 0)).reshape(K1 * CIN, C1)
    W[R_W2:R_W2 + K2 * C1, :C2] = np.transpose(np.asarray(c2w), (2, 1, 0)).reshape(K2 * C1, C2)
    # GRU / fc weights stay in native PyTorch (out, in) orientation because the
    # kernel computes feature-major (W @ x) products.
    W[R_WIH:R_WIH + 3 * HID, :C2] = np.asarray(Wih)
    W[R_WHH:R_WHH + 3 * HID, :HID] = np.asarray(Whh)
    W[R_WF1:R_WF1 + FC1, :HID] = np.asarray(f1w)
    W[R_WF2:R_WF2 + OUT, :FC1] = np.asarray(f2w)
    # biases: GRU/fc biases as columns, conv biases as rows
    W[R_BCOL:R_BCOL + 3 * HID, 0] = np.asarray(bih)
    W[R_BCOL:R_BCOL + 3 * HID, 1] = np.asarray(bhh)
    W[R_BCOL:R_BCOL + FC1, 2] = np.asarray(f1b)
    W[R_BCOL:R_BCOL + OUT, 3] = np.asarray(f2b)
    W[R_BROW, :C1] = np.asarray(c1b)
    W[R_BROW + 1, :C2] = np.asarray(c2b)
    return jnp.asarray(W)


def reference_forward(x, pt):
    """Pure-JAX reference written in PyTorch (NCL) conventions."""
    (c1w, c1b, c2w, c2b, Wih, Whh, bih, bhh, f1w, f1b, f2w, f2b) = pt
    with jax.default_matmul_precision("highest"):
        B, L, _ = x.shape
        xc = jnp.transpose(x, (0, 2, 1))                      # (B, CIN, L)
        xp = jnp.pad(xc, ((0, 0), (0, 0), (P1, P1)))
        y = c1b[None, :, None] + sum(
            jnp.einsum('oc,bcl->bol', c1w[:, :, k], xp[:, :, k:k + L])
            for k in range(K1))
        y = jnp.maximum(y, 0.0)
        y = jnp.max(y.reshape(B, C1, L // 2, 2), axis=-1)
        Lh = L // 2
        xp = jnp.pad(y, ((0, 0), (0, 0), (P2, P2)))
        y = c2b[None, :, None] + sum(
            jnp.einsum('oc,bcl->bol', c2w[:, :, k], xp[:, :, k:k + Lh])
            for k in range(K2))
        y = jnp.maximum(y, 0.0)
        y = jnp.max(y.reshape(B, C2, Lh // 2, 2), axis=-1)    # (B, C2, T)
        seq = jnp.transpose(y, (0, 2, 1))                     # (B, T, C2)

        h = jnp.zeros((B, HID), jnp.float32)
        Wir, Wiz, Win = Wih[:HID], Wih[HID:2 * HID], Wih[2 * HID:]
        Whr, Whz, Whn = Whh[:HID], Whh[HID:2 * HID], Whh[2 * HID:]
        bir, biz, bin_ = bih[:HID], bih[HID:2 * HID], bih[2 * HID:]
        bhr, bhz, bhn = bhh[:HID], bhh[HID:2 * HID], bhh[2 * HID:]
        for t in range(seq.shape[1]):
            xt = seq[:, t, :]
            r = jax.nn.sigmoid(xt @ Wir.T + bir + h @ Whr.T + bhr)
            z = jax.nn.sigmoid(xt @ Wiz.T + biz + h @ Whz.T + bhz)
            n = jnp.tanh(xt @ Win.T + bin_ + r * (h @ Whn.T + bhn))
            h = (1.0 - z) * n + z * h

        o = jnp.maximum(h @ f1w.T + f1b, 0.0)
        return o @ f2w.T + f2b


if __name__ == "__main__":
    key = jax.random.PRNGKey(0)
    keys = jax.random.split(key, 13)
    sc = 0.1
    # Parameters in PyTorch layouts (deterministic synthetic init).
    c1w = sc * jax.random.normal(keys[0], (C1, CIN, K1), jnp.float32)
    c1b = sc * jax.random.normal(keys[1], (C1,), jnp.float32)
    c2w = sc * jax.random.normal(keys[2], (C2, C1, K2), jnp.float32)
    c2b = sc * jax.random.normal(keys[3], (C2,), jnp.float32)
    Wih = sc * jax.random.normal(keys[4], (3 * HID, C2), jnp.float32)
    Whh = sc * jax.random.normal(keys[5], (3 * HID, HID), jnp.float32)
    bih = sc * jax.random.normal(keys[6], (3 * HID,), jnp.float32)
    bhh = sc * jax.random.normal(keys[7], (3 * HID,), jnp.float32)
    f1w = sc * jax.random.normal(keys[8], (FC1, HID), jnp.float32)
    f1b = sc * jax.random.normal(keys[9], (FC1,), jnp.float32)
    f2w = sc * jax.random.normal(keys[10], (OUT, FC1), jnp.float32)
    f2b = sc * jax.random.normal(keys[11], (OUT,), jnp.float32)
    x = jax.random.normal(keys[12], (BATCH, SEQ, CIN), jnp.float32)

    w_packed = pack_params(c1w, c1b, c2w, c2b, Wih, Whh, bih, bhh,
                           f1w, f1b, f2w, f2b)

    out = jax.block_until_ready(lite_pulse_detector(x, w_packed))

    ref = reference_forward(
        x, (c1w, c1b, c2w, c2b, Wih, Whh, bih, bhh, f1w, f1b, f2w, f2b))
    assert out.shape == (BATCH, OUT), out.shape
    max_diff = float(np.max(np.abs(np.asarray(out) - np.asarray(ref))))
    assert np.allclose(np.asarray(out), np.asarray(ref), atol=5e-3, rtol=5e-3), (
        "max abs diff:", max_diff)
    print("KERNEL_OK")
</pallas_src>

<mosaic_0001>
module attributes {stable_mosaic.version = 11 : i64} {
  func.func @lite_pulse_kernel(%arg0: memref<32x20xf32, #tpu.memory_space<vmem>>, %arg1: memref<216x128xf32, #tpu.memory_space<vmem>>, %arg2: memref<2x2xf32, #tpu.memory_space<vmem>>) attributes {dimension_semantics = [], scalar_prefetch = 0 : i64, scratch_operands = 0 : i64, tpu.core_type = #tpu.core_type<tc>} {
    %c0 = arith.constant 0 : index
    %c0_0 = arith.constant 0 : index
    %0 = vector.load %arg1[%c0, %c0_0] : memref<216x128xf32, #tpu.memory_space<vmem>>, vector<20x8xf32>
    %c24 = arith.constant 24 : index
    %c0_1 = arith.constant 0 : index
    %1 = vector.load %arg1[%c24, %c0_1] : memref<216x128xf32, #tpu.memory_space<vmem>>, vector<24x16xf32>
    %c48 = arith.constant 48 : index
    %c0_2 = arith.constant 0 : index
    %2 = vector.load %arg1[%c48, %c0_2] : memref<216x128xf32, #tpu.memory_space<vmem>>, vector<48x16xf32>
    %c96 = arith.constant 96 : index
    %c0_3 = arith.constant 0 : index
    %3 = vector.load %arg1[%c96, %c0_3] : memref<216x128xf32, #tpu.memory_space<vmem>>, vector<48x16xf32>
    %4 = arith.truncf %3 : vector<48x16xf32> to vector<48x16xbf16>
    %c144 = arith.constant 144 : index
    %c0_4 = arith.constant 0 : index
    %5 = vector.load %arg1[%c144, %c0_4] : memref<216x128xf32, #tpu.memory_space<vmem>>, vector<8x16xf32>
    %c152 = arith.constant 152 : index
    %c0_5 = arith.constant 0 : index
    %6 = vector.load %arg1[%c152, %c0_5] : memref<216x128xf32, #tpu.memory_space<vmem>>, vector<2x8xf32>
    %c160 = arith.constant 160 : index
    %c0_6 = arith.constant 0 : index
    %7 = vector.load %arg1[%c160, %c0_6] : memref<216x128xf32, #tpu.memory_space<vmem>>, vector<48x4xf32>
    %8 = vector.extract_strided_slice %7 {offsets = [0, 0], sizes = [48, 1], strides = [1, 1]} : vector<48x4xf32> to vector<48x1xf32>
    %9 = vector.extract_strided_slice %7 {offsets = [0, 1], sizes = [48, 1], strides = [1, 1]} : vector<48x4xf32> to vector<48x1xf32>
    %10 = vector.extract_strided_slice %7 {offsets = [0, 2], sizes = [8, 1], strides = [1, 1]} : vector<48x4xf32> to vector<8x1xf32>
    %11 = vector.extract_strided_slice %7 {offsets = [0, 3], sizes = [2, 1], strides = [1, 1]} : vector<48x4xf32> to vector<2x1xf32>
    %c208 = arith.constant 208 : index
    %c0_7 = arith.constant 0 : index
    %12 = vector.load %arg1[%c208, %c0_7] : memref<216x128xf32, #tpu.memory_space<vmem>>, vector<1x8xf32>
    %c209 = arith.constant 209 : index
    %c0_8 = arith.constant 0 : index
    %13 = vector.load %arg1[%c209, %c0_8] : memref<216x128xf32, #tpu.memory_space<vmem>>, vector<1x16xf32>
    %c0_9 = arith.constant 0 : index
    %c0_10 = arith.constant 0 : index
    %14 = vector.load %arg0[%c0_9, %c0_10] : memref<32x20xf32, #tpu.memory_space<vmem>>, vector<32x20xf32>
    %15 = arith.truncf %14 : vector<32x20xf32> to vector<32x20xbf16>
    %16 = arith.truncf %0 : vector<20x8xf32> to vector<20x8xbf16>
    %cst = arith.constant dense<0.000000e+00> : vector<32x8xf32>
    %17 = tpu.matmul %15, %16, %cst {dimension_numbers = #tpu.dot_dimension_numbers<[1], [0], [0], [1], [0, 0, 1, 1], [], []>} : vector<32x20xbf16>, vector<20x8xbf16>, vector<32x8xf32> -> vector<32x8xf32>
    %18 = vector.broadcast %12 : vector<1x8xf32> to vector<32x8xf32>
    %19 = arith.addf %17, %18 : vector<32x8xf32>
    %cst_11 = arith.constant 0.000000e+00 : f32
    %20 = vector.broadcast %cst_11 : f32 to vector<32x8xf32>
    %21 = arith.maximumf %19, %20 : vector<32x8xf32>
    %22 = vector.shape_cast %21 : vector<32x8xf32> to vector<8x4x8xf32>
    %23 = vector.extract_strided_slice %22 {offsets = [0, 0, 0], sizes = [8, 2, 8], strides = [1, 1, 1]} : vector<8x4x8xf32> to vector<8x2x8xf32>
    %24 = vector.extract_strided_slice %22 {offsets = [0, 2, 0], sizes = [8, 2, 8], strides = [1, 1, 1]} : vector<8x4x8xf32> to vector<8x2x8xf32>
    %25 = arith.maximumf %23, %24 : vector<8x2x8xf32>
    %26 = vector.shape_cast %25 : vector<8x2x8xf32> to vector<16x8xf32>
    %cst_12 = arith.constant 0.000000e+00 : f32
    %27 = vector.broadcast %cst_12 : f32 to vector<2x8xf32>
    %28 = tpu.concatenate %27, %26, %27 in 0 : vector<2x8xf32>, vector<16x8xf32>, vector<2x8xf32> -> vector<20x8xf32>
    %29 = vector.extract_strided_slice %28 {offsets = [0, 0], sizes = [16, 8], strides = [1, 1]} : vector<20x8xf32> to vector<16x8xf32>
    %30 = vector.extract_strided_slice %28 {offsets = [2, 0], sizes = [16, 8], strides = [1, 1]} : vector<20x8xf32> to vector<16x8xf32>
    %31 = vector.extract_strided_slice %28 {offsets = [4, 0], sizes = [16, 8], strides = [1, 1]} : vector<20x8xf32> to vector<16x8xf32>
    %32 = tpu.concatenate %29, %30, %31 in 1 : vector<16x8xf32>, vector<16x8xf32>, vector<16x8xf32> -> vector<16x24xf32>
    %33 = arith.truncf %32 : vector<16x24xf32> to vector<16x24xbf16>
    %34 = arith.truncf %1 : vector<24x16xf32> to vector<24x16xbf16>
    %cst_13 = arith.constant dense<0.000000e+00> : vector<16x16xf32>
    %35 = tpu.matmul %33, %34, %cst_13 {dimension_numbers = #tpu.dot_dimension_numbers<[1], [0], [0], [1], [0, 0, 1, 1], [], []>} : vector<16x24xbf16>, vector<24x16xbf16>, vector<16x16xf32> -> vector<16x16xf32>
    %36 = vector.broadcast %13 : vector<1x16xf32> to vector<16x16xf32>
    %37 = arith.addf %35, %36 : vector<16x16xf32>
    %cst_14 = arith.constant 0.000000e+00 : f32
    %38 = vector.broadcast %cst_14 : f32 to vector<16x16xf32>
    %39 = arith.maximumf %37, %38 : vector<16x16xf32>
    %40 = vector.shape_cast %39 : vector<16x16xf32> to vector<4x4x16xf32>
    %41 = vector.extract_strided_slice %40 {offsets = [0, 0, 0], sizes = [4, 2, 16], strides = [1, 1, 1]} : vector<4x4x16xf32> to vector<4x2x16xf32>
    %42 = vector.extract_strided_slice %40 {offsets = [0, 2, 0], sizes = [4, 2, 16], strides = [1, 1, 1]} : vector<4x4x16xf32> to vector<4x2x16xf32>
    %43 = arith.maximumf %41, %42 : vector<4x2x16xf32>
    %44 = vector.shape_cast %43 : vector<4x2x16xf32> to vector<8x16xf32>
    %45 = tpu.transpose %44, [1, 0] : vector<8x16xf32> -> vector<16x8xf32>
    %46 = arith.truncf %2 : vector<48x16xf32> to vector<48x16xbf16>
    %47 = arith.truncf %45 : vector<16x8xf32> to vector<16x8xbf16>
    %cst_15 = arith.constant dense<0.000000e+00> : vector<48x8xf32>
    %48 = tpu.matmul %46, %47, %cst_15 {dimension_numbers = #tpu.dot_dimension_numbers<[1], [0], [0], [1], [0, 0, 1, 1], [], []>} : vector<48x16xbf16>, vector<16x8xbf16>, vector<48x8xf32> -> vector<48x8xf32>
    %49 = vector.broadcast %8 : vector<48x1xf32> to vector<48x8xf32>
    %50 = arith.addf %48, %49 : vector<48x8xf32>
    %51 = vector.extract_strided_slice %50 {offsets = [0, 0], sizes = [16, 8], strides = [1, 1]} : vector<48x8xf32> to vector<16x8xf32>
    %52 = vector.extract_strided_slice %50 {offsets = [16, 0], sizes = [16, 8], strides = [1, 1]} : vector<48x8xf32> to vector<16x8xf32>
    %53 = vector.extract_strided_slice %50 {offsets = [32, 0], sizes = [16, 8], strides = [1, 1]} : vector<48x8xf32> to vector<16x8xf32>
    %cst_16 = arith.constant 0.000000e+00 : f32
    %54 = vector.broadcast %cst_16 : f32 to vector<16x2xf32>
    %55 = arith.truncf %54 : vector<16x2xf32> to vector<16x2xbf16>
    %cst_17 = arith.constant dense<0.000000e+00> : vector<48x2xf32>
    %56 = tpu.matmul %4, %55, %cst_17 {dimension_numbers = #tpu.dot_dimension_numbers<[1], [0], [0], [1], [0, 0, 1, 1], [], []>} : vector<48x16xbf16>, vector<16x2xbf16>, vector<48x2xf32> -> vector<48x2xf32>
    %57 = vector.broadcast %9 : vector<48x1xf32> to vector<48x2xf32>
    %58 = arith.addf %56, %57 : vector<48x2xf32>
    %59 = vector.extract_strided_slice %51 {offsets = [0, 0], sizes = [16, 2], strides = [1, 1]} : vector<16x8xf32> to vector<16x2xf32>
    %60 = vector.extract_strided_slice %58 {offsets = [0, 0], sizes = [16, 2], strides = [1, 1]} : vector<48x2xf32> to vector<16x2xf32>
    %61 = arith.addf %59, %60 : vector<16x2xf32>
    %cst_18 = arith.constant 5.000000e-01 : f32
    %62 = vector.broadcast %cst_18 : f32 to vector<16x2xf32>
    %63 = arith.mulf %62, %61 : vector<16x2xf32>
    %64 = math.tanh %63 : vector<16x2xf32>
    %cst_19 = arith.constant 1.000000e+00 : f32
    %65 = vector.broadcast %cst_19 : f32 to vector<16x2xf32>
    %66 = arith.addf %64, %65 : vector<16x2xf32>
    %cst_20 = arith.constant 5.000000e-01 : f32
    %67 = vector.broadcast %cst_20 : f32 to vector<16x2xf32>
    %68 = arith.mulf %67, %66 : vector<16x2xf32>
    %69 = vector.extract_strided_slice %52 {offsets = [0, 0], sizes = [16, 2], strides = [1, 1]} : vector<16x8xf32> to vector<16x2xf32>
    %70 = vector.extract_strided_slice %58 {offsets = [16, 0], sizes = [16, 2], strides = [1, 1]} : vector<48x2xf32> to vector<16x2xf32>
    %71 = arith.addf %69, %70 : vector<16x2xf32>
    %cst_21 = arith.constant 5.000000e-01 : f32
    %72 = vector.broadcast %cst_21 : f32 to vector<16x2xf32>
    %73 = arith.mulf %72, %71 : vector<16x2xf32>
    %74 = math.tanh %73 : vector<16x2xf32>
    %cst_22 = arith.constant 1.000000e+00 : f32
    %75 = vector.broadcast %cst_22 : f32 to vector<16x2xf32>
    %76 = arith.addf %74, %75 : vector<16x2xf32>
    %cst_23 = arith.constant 5.000000e-01 : f32
    %77 = vector.broadcast %cst_23 : f32 to vector<16x2xf32>
    %78 = arith.mulf %77, %76 : vector<16x2xf32>
    %79 = vector.extract_strided_slice %53 {offsets = [0, 0], sizes = [16, 2], strides = [1, 1]} : vector<16x8xf32> to vector<16x2xf32>
    %80 = vector.extract_strided_slice %58 {offsets = [32, 0], sizes = [16, 2], strides = [1, 1]} : vector<48x2xf32> to vector<16x2xf32>
    %81 = arith.mulf %68, %80 : vector<16x2xf32>
    %82 = arith.addf %79, %81 : vector<16x2xf32>
    %83 = math.tanh %82 : vector<16x2xf32>
    %84 = arith.subf %54, %83 : vector<16x2xf32>
    %85 = arith.mulf %78, %84 : vector<16x2xf32>
    %86 = arith.addf %83, %85 : vector<16x2xf32>
    %87 = arith.truncf %86 : vector<16x2xf32> to vector<16x2xbf16>
    %cst_24 = arith.constant dense<0.000000e+00> : vector<48x2xf32>
    %88 = tpu.matmul %4, %87, %cst_24 {dimension_numbers = #tpu.dot_dimension_numbers<[1], [0], [0], [1], [0, 0, 1, 1], [], []>} : vector<48x16xbf16>, vector<16x2xbf16>, vector<48x2xf32> -> vector<48x2xf32>
    %89 = vector.broadcast %9 : vector<48x1xf32> to vector<48x2xf32>
    %90 = arith.addf %88, %89 : vector<48x2xf32>
    %91 = vector.extract_strided_slice %51 {offsets = [0, 2], sizes = [16, 2], strides = [1, 1]} : vector<16x8xf32> to vector<16x2xf32>
    %92 = vector.extract_strided_slice %90 {offsets = [0, 0], sizes = [16, 2], strides = [1, 1]} : vector<48x2xf32> to vector<16x2xf32>
    %93 = arith.addf %91, %92 : vector<16x2xf32>
    %cst_25 = arith.constant 5.000000e-01 : f32
    %94 = vector.broadcast %cst_25 : f32 to vector<16x2xf32>
    %95 = arith.mulf %94, %93 : vector<16x2xf32>
    %96 = math.tanh %95 : vector<16x2xf32>
    %cst_26 = arith.constant 1.000000e+00 : f32
    %97 = vector.broadcast %cst_26 : f32 to vector<16x2xf32>
    %98 = arith.addf %96, %97 : vector<16x2xf32>
    %cst_27 = arith.constant 5.000000e-01 : f32
    %99 = vector.broadcast %cst_27 : f32 to vector<16x2xf32>
    %100 = arith.mulf %99, %98 : vector<16x2xf32>
    %101 = vector.extract_strided_slice %52 {offsets = [0, 2], sizes = [16, 2], strides = [1, 1]} : vector<16x8xf32> to vector<16x2xf32>
    %102 = vector.extract_strided_slice %90 {offsets = [16, 0], sizes = [16, 2], strides = [1, 1]} : vector<48x2xf32> to vector<16x2xf32>
    %103 = arith.addf %101, %102 : vector<16x2xf32>
    %cst_28 = arith.constant 5.000000e-01 : f32
    %104 = vector.broadcast %cst_28 : f32 to vector<16x2xf32>
    %105 = arith.mulf %104, %103 : vector<16x2xf32>
    %106 = math.tanh %105 : vector<16x2xf32>
    %cst_29 = arith.constant 1.000000e+00 : f32
    %107 = vector.broadcast %cst_29 : f32 to vector<16x2xf32>
    %108 = arith.addf %106, %107 : vector<16x2xf32>
    %cst_30 = arith.constant 5.000000e-01 : f32
    %109 = vector.broadcast %cst_30 : f32 to vector<16x2xf32>
    %110 = arith.mulf %109, %108 : vector<16x2xf32>
    %111 = vector.extract_strided_slice %53 {offsets = [0, 2], sizes = [16, 2], strides = [1, 1]} : vector<16x8xf32> to vector<16x2xf32>
    %112 = vector.extract_strided_slice %90 {offsets = [32, 0], sizes = [16, 2], strides = [1, 1]} : vector<48x2xf32> to vector<16x2xf32>
    %113 = arith.mulf %100, %112 : vector<16x2xf32>
    %114 = arith.addf %111, %113 : vector<16x2xf32>
    %115 = math.tanh %114 : vector<16x2xf32>
    %116 = arith.subf %86, %115 : vector<16x2xf32>
    %117 = arith.mulf %110, %116 : vector<16x2xf32>
    %118 = arith.addf %115, %117 : vector<16x2xf32>
    %119 = arith.truncf %118 : vector<16x2xf32> to vector<16x2xbf16>
    %cst_31 = arith.constant dense<0.000000e+00> : vector<48x2xf32>
    %120 = tpu.matmul %4, %119, %cst_31 {dimension_numbers = #tpu.dot_dimension_numbers<[1], [0], [0], [1], [0, 0, 1, 1], [], []>} : vector<48x16xbf16>, vector<16x2xbf16>, vector<48x2xf32> -> vector<48x2xf32>
    %121 = vector.broadcast %9 : vector<48x1xf32> to vector<48x2xf32>
    %122 = arith.addf %120, %121 : vector<48x2xf32>
    %123 = vector.extract_strided_slice %51 {offsets = [0, 4], sizes = [16, 2], strides = [1, 1]} : vector<16x8xf32> to vector<16x2xf32>
    %124 = vector.extract_strided_slice %122 {offsets = [0, 0], sizes = [16, 2], strides = [1, 1]} : vector<48x2xf32> to vector<16x2xf32>
    %125 = arith.addf %123, %124 : vector<16x2xf32>
    %cst_32 = arith.constant 5.000000e-01 : f32
    %126 = vector.broadcast %cst_32 : f32 to vector<16x2xf32>
    %127 = arith.mulf %126, %125 : vector<16x2xf32>
    %128 = math.tanh %127 : vector<16x2xf32>
    %cst_33 = arith.constant 1.000000e+00 : f32
    %129 = vector.broadcast %cst_33 : f32 to vector<16x2xf32>
    %130 = arith.addf %128, %129 : vector<16x2xf32>
    %cst_34 = arith.constant 5.000000e-01 : f32
    %131 = vector.broadcast %cst_34 : f32 to vector<16x2xf32>
    %132 = arith.mulf %131, %130 : vector<16x2xf32>
    %133 = vector.extract_strided_slice %52 {offsets = [0, 4], sizes = [16, 2], strides = [1, 1]} : vector<16x8xf32> to vector<16x2xf32>
    %134 = vector.extract_strided_slice %122 {offsets = [16, 0], sizes = [16, 2], strides = [1, 1]} : vector<48x2xf32> to vector<16x2xf32>
    %135 = arith.addf %133, %134 : vector<16x2xf32>
    %cst_35 = arith.constant 5.000000e-01 : f32
    %136 = vector.broadcast %cst_35 : f32 to vector<16x2xf32>
    %137 = arith.mulf %136, %135 : vector<16x2xf32>
    %138 = math.tanh %137 : vector<16x2xf32>
    %cst_36 = arith.constant 1.000000e+00 : f32
    %139 = vector.broadcast %cst_36 : f32 to vector<16x2xf32>
    %140 = arith.addf %138, %139 : vector<16x2xf32>
    %cst_37 = arith.constant 5.000000e-01 : f32
    %141 = vector.broadcast %cst_37 : f32 to vector<16x2xf32>
    %142 = arith.mulf %141, %140 : vector<16x2xf32>
    %143 = vector.extract_strided_slice %53 {offsets = [0, 4], sizes = [16, 2], strides = [1, 1]} : vector<16x8xf32> to vector<16x2xf32>
    %144 = vector.extract_strided_slice %122 {offsets = [32, 0], sizes = [16, 2], strides = [1, 1]} : vector<48x2xf32> to vector<16x2xf32>
    %145 = arith.mulf %132, %144 : vector<16x2xf32>
    %146 = arith.addf %143, %145 : vector<16x2xf32>
    %147 = math.tanh %146 : vector<16x2xf32>
    %148 = arith.subf %118, %147 : vector<16x2xf32>
    %149 = arith.mulf %142, %148 : vector<16x2xf32>
    %150 = arith.addf %147, %149 : vector<16x2xf32>
    %151 = arith.truncf %150 : vector<16x2xf32> to vector<16x2xbf16>
    %cst_38 = arith.constant dense<0.000000e+00> : vector<48x2xf32>
    %152 = tpu.matmul %4, %151, %cst_38 {dimension_numbers = #tpu.dot_dimension_numbers<[1], [0], [0], [1], [0, 0, 1, 1], [], []>} : vector<48x16xbf16>, vector<16x2xbf16>, vector<48x2xf32> -> vector<48x2xf32>
    %153 = vector.broadcast %9 : vector<48x1xf32> to vector<48x2xf32>
    %154 = arith.addf %152, %153 : vector<48x2xf32>
    %155 = vector.extract_strided_slice %51 {offsets = [0, 6], sizes = [16, 2], strides = [1, 1]} : vector<16x8xf32> to vector<16x2xf32>
    %156 = vector.extract_strided_slice %154 {offsets = [0, 0], sizes = [16, 2], strides = [1, 1]} : vector<48x2xf32> to vector<16x2xf32>
    %157 = arith.addf %155, %156 : vector<16x2xf32>
    %cst_39 = arith.constant 5.000000e-01 : f32
    %158 = vector.broadcast %cst_39 : f32 to vector<16x2xf32>
    %159 = arith.mulf %158, %157 : vector<16x2xf32>
    %160 = math.tanh %159 : vector<16x2xf32>
    %cst_40 = arith.constant 1.000000e+00 : f32
    %161 = vector.broadcast %cst_40 : f32 to vector<16x2xf32>
    %162 = arith.addf %160, %161 : vector<16x2xf32>
    %cst_41 = arith.constant 5.000000e-01 : f32
    %163 = vector.broadcast %cst_41 : f32 to vector<16x2xf32>
    %164 = arith.mulf %163, %162 : vector<16x2xf32>
    %165 = vector.extract_strided_slice %52 {offsets = [0, 6], sizes = [16, 2], strides = [1, 1]} : vector<16x8xf32> to vector<16x2xf32>
    %166 = vector.extract_strided_slice %154 {offsets = [16, 0], sizes = [16, 2], strides = [1, 1]} : vector<48x2xf32> to vector<16x2xf32>
    %167 = arith.addf %165, %166 : vector<16x2xf32>
    %cst_42 = arith.constant 5.000000e-01 : f32
    %168 = vector.broadcast %cst_42 : f32 to vector<16x2xf32>
    %169 = arith.mulf %168, %167 : vector<16x2xf32>
    %170 = math.tanh %169 : vector<16x2xf32>
    %cst_43 = arith.constant 1.000000e+00 : f32
    %171 = vector.broadcast %cst_43 : f32 to vector<16x2xf32>
    %172 = arith.addf %170, %171 : vector<16x2xf32>
    %cst_44 = arith.constant 5.000000e-01 : f32
    %173 = vector.broadcast %cst_44 : f32 to vector<16x2xf32>
    %174 = arith.mulf %173, %172 : vector<16x2xf32>
    %175 = vector.extract_strided_slice %53 {offsets = [0, 6], sizes = [16, 2], strides = [1, 1]} : vector<16x8xf32> to vector<16x2xf32>
    %176 = vector.extract_strided_slice %154 {offsets = [32, 0], sizes = [16, 2], strides = [1, 1]} : vector<48x2xf32> to vector<16x2xf32>
    %177 = arith.mulf %164, %176 : vector<16x2xf32>
    %178 = arith.addf %175, %177 : vector<16x2xf32>
    %179 = math.tanh %178 : vector<16x2xf32>
    %180 = arith.subf %150, %179 : vector<16x2xf32>
    %181 = arith.mulf %174, %180 : vector<16x2xf32>
    %182 = arith.addf %179, %181 : vector<16x2xf32>
    %183 = arith.truncf %5 : vector<8x16xf32> to vector<8x16xbf16>
    %184 = arith.truncf %182 : vector<16x2xf32> to vector<16x2xbf16>
    %cst_45 = arith.constant dense<0.000000e+00> : vector<8x2xf32>
    %185 = tpu.matmul %183, %184, %cst_45 {dimension_numbers = #tpu.dot_dimension_numbers<[1], [0], [0], [1], [0, 0, 1, 1], [], []>} : vector<8x16xbf16>, vector<16x2xbf16>, vector<8x2xf32> -> vector<8x2xf32>
    %186 = vector.broadcast %10 : vector<8x1xf32> to vector<8x2xf32>
    %187 = arith.addf %185, %186 : vector<8x2xf32>
    %cst_46 = arith.constant 0.000000e+00 : f32
    %188 = vector.broadcast %cst_46 : f32 to vector<8x2xf32>
    %189 = arith.maximumf %187, %188 : vector<8x2xf32>
    %190 = arith.truncf %6 : vector<2x8xf32> to vector<2x8xbf16>
    %191 = arith.truncf %189 : vector<8x2xf32> to vector<8x2xbf16>
    %cst_47 = arith.constant dense<0.000000e+00> : vector<2x2xf32>
    %192 = tpu.matmul %190, %191, %cst_47 {dimension_numbers = #tpu.dot_dimension_numbers<[1], [0], [0], [1], [0, 0, 1, 1], [], []>} : vector<2x8xbf16>, vector<8x2xbf16>, vector<2x2xf32> -> vector<2x2xf32>
    %193 = vector.broadcast %11 : vector<2x1xf32> to vector<2x2xf32>
    %194 = arith.addf %192, %193 : vector<2x2xf32>
    %c0_48 = arith.constant 0 : index
    %c0_49 = arith.constant 0 : index
    %195 = vector.load %arg2[%c0_48, %c0_49] : memref<2x2xf32, #tpu.memory_space<vmem>>, vector<2x2xf32>
    tpu.vector_store %arg2[%c0_48, %c0_49], %194 {strides = array<i32>} : memref<2x2xf32, #tpu.memory_space<vmem>>, vector<2x2xf32>,
    return
  }
}

</mosaic_0001>

<bundles_post_ra>
// kernel: lite_pulse_detector.1
= control target key start
LH: loop header
LB: loop body
LE: loop exit
PB: predicated region body
PF: predicated region fallthrough
CT: control target
= control target key end

     0   :  { %7 = vsyncpa [#allocation3], 0  ;;  %s961_s12 = smov [#allocation2]   ;;  %s962_s14 = smov 128   ;;  %s1171_s0 = inlined_call_operand.vmem [shape: f32[32,20], index: 0, kind: input, shape index: {}]   ;;  %s1172_s1 = inlined_call_operand.hbm [shape: f32[216,128], index: 1, kind: input, shape index: {}]   ;;  %s1173_s2 = inlined_call_operand.vmem [shape: f32[2,2], index: 2, kind: output, shape index: {}]  }
   0x1   :  { %s14_s11 = sshll.u32 %s1172_s1, 4  ;;  %s16_s13 = sshll.u32 %s961_s12, 4  ;;  %s15_s11 = int_to_ptr.hbm [resolvable:$true] %s14_s11  ;;  %s17_s13 = int_to_ptr.vmem [resolvable:$true] %s16_s13 }
   0x2   :  { %s963_s15 = smov 8  }
   0x3   :  { %22 = dma.hbm_to_vmem [thread:$0]  %s15_s11, 3456, %s17_s13, [#allocation3], %s962_s14, %s962_s14, %s963_s15  }
   0x4   :  { %959 = dma.done.wait [#allocation3], 3456  }
   0x5   :  { %960 = vsyncadd [#allocation3], 4294963840  ;;  %v30_v0 = vld [vmem:[#allocation2 + $0x10] sm:$0xf]  ;;  %vm75_vm0 = vcmask 1041408   ;;  %v28_v2 = vld [vmem:[#allocation2] sm:$0xff] }
   0x6   :  { %v66_v1 = vpack.c.bf16 %v30_v0, %v30_v0  ;;  %v29_v3 = vld [vmem:[#allocation2 + $0x8] sm:$0xff]  ;;  %v59_v6 = vld [vmem:[%s1171_s0] sm:$0xff]  ;;  %v60_v7 = vld [vmem:[%s1171_s0 + $0x8] sm:$0xff]  ;;  %vm68_vm1 = vcmask 162816   ;;  %vm179_vm2 = vcmask 1045504   ;;  %vm191_vm3 = vcmask 1043456  }
   0x7   :  { %v65_v5 = vpack.c.bf16 %v29_v3, %v28_v2  ;;  %v63_v8 = vpack.c.bf16 %v60_v7, %v59_v6  ;;  %v61_v9 = vld [vmem:[%s1171_s0 + $0x10] sm:$0xff]  ;;  %v62_v10 = vld [vmem:[%s1171_s0 + $0x18] sm:$0xff]  ;;  %s964_s0 = smov 16   ;;  %v32_v2 = vld [vmem:[#allocation2 + $0x20] sm:$0xff]  ;;  %vm203_vm4 = vcmask 64512   ;;  %vm206_vm5 = vcmask 130048  }
   0x8   :  { %v77_v4 = vsel %vm75_vm0, %v66_v1, 0  ;;  %v64_v11 = vpack.c.bf16 %v62_v10, %v61_v9  ;;  %v885_v12 = vld [vmem:[#allocation2 + $0xd0] ss:$0 sm:$0xff]  ;;  %v33_v62 = vld [vmem:[#allocation2 + $0x28] sm:$0xff]  ;;  %v31_v1 = vld [vmem:[#allocation2 + $0x18] sm:$0xff]  ;;  %vm213_vm6 = vcmask 195584  }
   0x9   :  { %85 = vmatpush.bf16.msra.mxu0 %v77_v4  ;;  %v211_v63 = vpack.c.bf16 %v33_v62, %v33_v62  ;;  %v210_v3 = vpack.c.bf16 %v32_v2, %v31_v1  ;;  %s967_s23 = smov 2   ;;  %s968_s24 = smov 126   ;;  %vm810_vm7 = vcmask 9216  }
   0xa   :  { %s969_s25 = smov 4   ;;  %s970_s26 = smov 124  }
   0xb   :  { %v218_v0 = vsel %vm191_vm3, %v211_v63, 0  ;;  %s971_s27 = smov 6   ;;  %s972_s28 = smov 122  }
   0xc   :  { %226 = vmatpush.bf16.msra.mxu1 %v218_v0 }
   0xd   :  { %86 = vmatpush.bf16.msra.mxu0 %v65_v5 }
  0x10   :  { %817 = vmatmul.msk.bf16.vlgmr.msra.gmra.mxu0 %vm68_vm1, %v63_v8  ;;  %227 = vmatpush.bf16.msra.mxu1 %v210_v3 }
  0x20   :  { %818 = vmatmul.msk.bf16.gmra.mxu0 %vm68_vm1, %v64_v11 }
  0x8d   :  { %v88_v13 = vpop.f32.mrf.mxu0 }
  0x8e   :  { %v89_v14 = vadd.f32 %v885_v12, %v88_v13 }
  0x90   :  { %v98_v15 = vmax.f32 %v89_v14, 0.0 }
  0x92   :  { %v106_v16 = vrot.slane %v98_v15, 4  ;;  %v819_v17 = vrot.slane %v98_v15, 10 }
  0x94   :  { %v820_v18 = vrot.slane %v106_v16, 10  ;;  %v138_v19 = vmax.f32 %v98_v15, %v819_v17  ;;  %v40_v15 = vld [vmem:[#allocation2 + $0x60] sm:$0xff]  ;;  %v965_v17 = vmov 0  }
  0x95   :  { %v90_v20 = vpop.f32.mrf.mxu0  ;;  %410 = vmatpush.bf16.msra.mxu3 %v965_v17  ;;  %875 = vset.pattern.permute.xlu2 %v965_v17 }
  0x96   :  { %v139_v21 = vmax.f32 %v106_v16, %v820_v18  ;;  %155 = vst [vmem:[#allocation1 + $0x1] ss:$4 sm:$0xff] %v138_v19  ;;  %v91_v22 = vadd.f32 %v885_v12, %v90_v20  ;;  %v41_v16 = vld [vmem:[#allocation2 + $0x68] sm:$0xff]  ;;  %v886_v19 = vld [vmem:[#allocation2 + $0xd1] ss:$0 sm:$0xff] }
  0x97   :  { %v1018_v18 = vpack.c.bf16 %v41_v16, %v40_v15 }
  0x98   :  { %157 = vst [vmem:[#allocation1 + $0x2] ss:$4 sm:$0xff] %v139_v21  ;;  %v99_v23 = vmax.f32 %v91_v22, 0.0 }
  0x99   :  { %835 = vmatmul.msk.bf16.vlgmr.msra.gmra.mxu3 %vm206_vm5, %v1018_v18 }
  0x9a   :  { %v107_v24 = vrot.slane %v99_v23, 4  ;;  %v821_v25 = vrot.slane %v99_v23, 10 }
  0x9c   :  { %v822_v26 = vrot.slane %v107_v24, 10  ;;  %v140_v27 = vmax.f32 %v99_v23, %v821_v25 }
  0x9d   :  { %v93_v28 = vpop.f32.mrf.mxu0 }
  0x9e   :  { %v141_v29 = vmax.f32 %v107_v24, %v822_v26  ;;  %159 = vst [vmem:[#allocation1 + $0x3] ss:$4 sm:$0xff] %v140_v27  ;;  %v94_v30 = vadd.f32 %v885_v12, %v93_v28 }
  0xa0   :  { %161 = vst [vmem:[#allocation1 + $0x20] ss:$4 sm:$0xff] %v141_v29  ;;  %v100_v31 = vmax.f32 %v94_v30, 0.0 }
  0xa2   :  { %v108_v32 = vrot.slane %v100_v31, 4  ;;  %v823_v33 = vrot.slane %v100_v31, 10 }
  0xa4   :  { %v824_v34 = vrot.slane %v108_v32, 10  ;;  %v142_v35 = vmax.f32 %v100_v31, %v823_v33 }
  0xa5   :  { %v95_v36 = vpop.f32.mrf.mxu0  ;;  %v168_v45 = vld.sshfl [vmem:[#allocation1] sm:$0xff pattern:$0x73625140] }
  0xa6   :  { %v143_v37 = vmax.f32 %v108_v32, %v824_v34  ;;  %163 = vst [vmem:[#allocation1 + $0x21] ss:$4 sm:$0xff] %v142_v35  ;;  %v96_v38 = vadd.f32 %v885_v12, %v95_v36  ;;  %v175_v47 = vsel %vm75_vm0, 0.0, %v168_v45  ;;  %v1032_v45 = vld [vmem:[#allocation2 + $0xa0] sm:$0xff] }
  0xa7   :  { %v180_v51 = vrot.slane %v175_v47, 2  ;;  %v192_v58 = vrot.slane %v175_v47, 4 }
  0xa8   :  { %165 = vst [vmem:[#allocation1 + $0x22] ss:$4 sm:$0xff] %v143_v37  ;;  %v101_v39 = vmax.f32 %v96_v38, 0.0  ;;  %v42_v37 = vld [vmem:[#allocation2 + $0x70] sm:$0xff]  ;;  %v43_v38 = vld [vmem:[#allocation2 + $0x78] sm:$0xff] }
  0xaa   :  { %v109_v40 = vrot.slane %v101_v39, 4  ;;  %v825_v41 = vrot.slane %v101_v39, 10 }
  0xac   :  { %v826_v42 = vrot.slane %v109_v40, 10  ;;  %v144_v43 = vmax.f32 %v101_v39, %v825_v41  ;;  %v1024_v39 = vpack.c.bf16 %v43_v38, %v42_v37  ;;  %v966_v41 = vmov 1  }
  0xad   :  { %877 = vset.pattern.permute.xlu0 %v966_v41 }
  0xae   :  { %v145_v44 = vmax.f32 %v109_v40, %v826_v42  ;;  %167 = vst [vmem:[#allocation1 + $0x23] ss:$4 sm:$0xff] %v144_v43  ;;  %836 = vmatmul.msk.bf16.gmra.mxu3 %vm206_vm5, %v1024_v39  ;;  %v52_v40 = vld [vmem:[#allocation2 + $0xa8] sm:$0xff]  ;;  %v44_v42 = vld [vmem:[#allocation2 + $0x80] sm:$0xff] }
  0xaf   :  { %314 = vperm.xlu2 %875, %v52_v40   ;;  %v45_v43 = vld [vmem:[#allocation2 + $0x88] sm:$0xff] }
  0xb0   :  { %170 = vst [vmem:[#allocation1] ss:$4 sm:$0xff] %v145_v44  ;;  %v1028_v44 = vpack.c.bf16 %v45_v43, %v44_v42 }
  0xb5   :  { %v169_v46 = vld.sshfl [vmem:[#allocation1 + $0x20] sm:$0xff pattern:$0x73625140] }
  0xb6   :  { %v181_v49 = vrot.slane %v169_v46, 2  ;;  %v193_v57 = vrot.slane %v169_v46, 4 }
  0xb7   :  { %v171_v48 = vld.sshfl [vmem:[#allocation1] sm:$0xff pattern:$0x73625140]  ;;  %876 = vset.pattern.permute.xlu2 %v966_v41 }
  0xb8   :  { %v176_v50 = vsel %vm75_vm0, %v171_v48, 0.0  ;;  %v182_v53 = vsel %vm179_vm2, %v180_v51, %v181_v49  ;;  %v194_v60 = vsel %vm191_vm3, %v192_v58, %v193_v57  ;;  %371 = vperm.xlu2 %876, %v1032_v45   ;;  %v55_v48 = vld [vmem:[#allocation2 + $0xc0] sm:$0xff]  ;;  %v56_v58 = vld [vmem:[#allocation2 + $0xc8] sm:$0xff] }
  0xb9   :  { %v183_v52 = vrot.slane %v176_v50, 2  ;;  %v195_v56 = vrot.slane %v176_v50, 4  ;;  %v35_v50 = vld [vmem:[#allocation2 + $0x38] sm:$0xff] }
  0xbb   :  { %v184_v54 = vsel %vm179_vm2, %v181_v49, %v183_v52  ;;  %v196_v59 = vsel %vm191_vm3, %v193_v57, %v195_v56  ;;  %v34_v49 = vld [vmem:[#allocation2 + $0x30] sm:$0xff]  ;;  %v37_v56 = vld [vmem:[#allocation2 + $0x48] sm:$0xff] }
  0xbc   :  { %v864_v55 = vpack.i.bf16 %v184_v54, %v182_v53  ;;  %v869_v61 = vpack.i.bf16 %v196_v59, %v194_v60  ;;  %v303_v53 = vpack.c.bf16 %v35_v50, %v34_v49  ;;  %v54_v54 = vld [vmem:[#allocation2 + $0xb8] sm:$0xff]  ;;  %v38_v59 = vld [vmem:[#allocation2 + $0x50] sm:$0xff] }
  0xbd   :  { %v39_v60 = vld [vmem:[#allocation2 + $0x58] sm:$0xff] }
  0xbe   :  { %865 = vrot.lane.b32.xlu0 %v864_v55, %s963_s15  ;;  %837 = vmatmul.msk.bf16.gmra.mxu3 %vm206_vm5, %v1028_v44  ;;  %v36_v55 = vld [vmem:[#allocation2 + $0x40] sm:$0xff] }
  0xbf   :  { %v304_v57 = vpack.c.bf16 %v37_v56, %v36_v55 }
  0xc0   :  { %878 = vset.pattern.permute.xlu2 %v965_v17 }
  0xc6   :  { %870 = vrot.lane.b32.xlu0 %v869_v61, %s964_s0  ;;  %v305_v61 = vpack.c.bf16 %v39_v60, %v38_v59 }
  0xce   :  { %375 = vperm.xlu0 %877, %v52_v40  }
 0x109   :  { %v315_v62 = vpop.permute.xlu2 %314 }
 0x112   :  { %v1042_v0 = vpop.permute.xlu2 %371 }
 0x11c   :  { %v412_v63 = vpop.f32.mrf.mxu3 }
 0x124   :  { %v414_v1 = vpop.f32.mrf.mxu3 }
 0x130   :  { %v866_v4 = vpop.permute.xlu0 %865 }
 0x131   :  { %v868_v5 = vunpack.i.h.bf16 %v866_v4  ;;  %v867_v6 = vunpack.i.l.bf16 %v866_v4 }
 0x133   :  { %v205_v10 = vsel %vm203_vm4, %v169_v46, %v868_v5  ;;  %v204_v11 = vsel %vm203_vm4, %v175_v47, %v867_v6  ;;  %v53_v46 = vld [vmem:[#allocation2 + $0xb0] sm:$0xff]  ;;  %v417_v6 = vpop.f32.mrf.mxu3 }
 0x134   :  { %379 = vperm.xlu0 %877, %v53_v46   ;;  %319 = vperm.xlu2 %878, %v53_v46  }
 0x138   :  { %v871_v7 = vpop.permute.xlu0 %870 }
 0x139   :  { %v873_v8 = vunpack.i.h.bf16 %v871_v7  ;;  %v872_v9 = vunpack.i.l.bf16 %v871_v7 }
 0x13b   :  { %v207_v12 = vsel %vm206_vm5, %v204_v11, %v872_v9  ;;  %v208_v13 = vsel %vm206_vm5, %v205_v10, %v873_v8  ;;  %v413_v8 = vadd.f32 %v412_v63, %v1042_v0  ;;  %v419_v16 = vpop.f32.mrf.mxu3 }
 0x13c   :  { %v209_v14 = vpack.c.bf16 %v208_v13, %v207_v12  ;;  %387 = vperm.xlu0 %877, %v55_v48   ;;  %324 = vperm.xlu2 %878, %v54_v54  }
 0x13e   :  { %827 = vmatmul.msk.bf16.vlgmr.msra.gmra.mxu1 %vm213_vm6, %v209_v14 }
 0x140   :  { %v1044_v5 = vpop.permute.xlu0 %375 }
 0x141   :  { %v415_v15 = vadd.f32 %v414_v1, %v1044_v5 }
 0x144   :  { %880 = vset.pattern.permute.xlu0 %v965_v17  ;;  %879 = vset.pattern.permute.xlu2 %v966_v41 }
 0x145   :  { %329 = vperm.xlu0 %880, %v55_v48   ;;  %383 = vperm.xlu2 %879, %v54_v54  }
 0x14d   :  { %391 = vperm.xlu2 %879, %v56_v58  }
 0x155   :  { %881 = vset.pattern.permute.xlu2 %v965_v17 }
 0x156   :  { %334 = vperm.xlu2 %881, %v56_v58  }
 0x18e   :  { %v320_v2 = vpop.permute.xlu2 %319 }
 0x196   :  { %v325_v11 = vpop.permute.xlu2 %324 }
 0x1a6   :  { %v1050_v13 = vpop.permute.xlu0 %379 }
 0x1bb   :  { %v229_v20 = vpop.f32.mrf.mxu1 }
 0x1bc   :  { %v230_v21 = vadd.f32 %v886_v19, %v229_v20  ;;  %v1056_v20 = vpop.permute.xlu2 %383 }
 0x1be   :  { %v234_v22 = vmax.f32 %v230_v21, 0.0 }
 0x1c0   :  { %v238_v23 = vrot.slane %v234_v22, 4  ;;  %v828_v24 = vrot.slane %v234_v22, 10 }
 0x1c2   :  { %v829_v25 = vrot.slane %v238_v23, 10  ;;  %v254_v26 = vmax.f32 %v234_v22, %v828_v24  ;;  %v422_v24 = vpop.f32.mrf.mxu3 }
 0x1c3   :  { %v231_v27 = vpop.f32.mrf.mxu1 }
 0x1c4   :  { %v255_v28 = vmax.f32 %v238_v23, %v829_v25  ;;  %262 = vst [vmem:[#allocation1] ss:$4 sm:$0xff] %v254_v26  ;;  %v232_v29 = vadd.f32 %v886_v19, %v231_v27  ;;  %v1058_v23 = vpop.permute.xlu0 %387 }
 0x1c6   :  { %264 = vst [vmem:[#allocation1 + $0x1] ss:$4 sm:$0xff] %v255_v28  ;;  %v235_v30 = vmax.f32 %v232_v29, 0.0  ;;  %v418_v29 = vadd.f32 %v417_v6, %v1050_v13 }
 0x1c8   :  { %v239_v31 = vrot.slane %v235_v30, 4  ;;  %v830_v32 = vrot.slane %v235_v30, 10 }
 0x1ca   :  { %v831_v33 = vrot.slane %v239_v31, 10  ;;  %v256_v34 = vmax.f32 %v235_v30, %v830_v32  ;;  %v420_v30 = vadd.f32 %v419_v16, %v1056_v20  ;;  %v424_v46 = vpop.f32.mrf.mxu3 }
 0x1cc   :  { %v257_v35 = vmax.f32 %v239_v31, %v831_v33  ;;  %266 = vst [vmem:[#allocation1 + $0x2] ss:$4 sm:$0xff] %v256_v34  ;;  %v423_v31 = vadd.f32 %v422_v24, %v1058_v23  ;;  %v330_v37 = vpop.permute.xlu0 %329 }
 0x1ce   :  { %268 = vst [vmem:[#allocation1 + $0x3] ss:$4 sm:$0xff] %v257_v35  ;;  %v1068_v35 = vpop.permute.xlu2 %391 }
 0x1cf   :  { %v425_v49 = vadd.f32 %v424_v46, %v1068_v35 }
 0x1d5   :  { %v269_v36 = vld.sshfl [vmem:[#allocation1] sm:$0xff pattern:$0x73625140] }
 0x1d6   :  { %271 = vxpose.xlu1.b32.start.end [1/1] (short) (narrow) %v269_v36, 16 }
 0x229   :  { %874 = vset.pattern.permute.xlu1 %v965_v17 }
 0x238   :  { %309 = vperm.xlu1 %874, %v1032_v45  }
 0x27a   :  { %v287_v47 = vpop.trf.xlu1 }
 0x282   :  { %v288_v51 = vpop.trf.xlu1 }
 0x283   :  { %v306_v52 = vpack.c.bf16 %v288_v51, %v287_v47  ;;  %v335_v51 = vpop.permute.xlu2 %334 }
 0x285   :  { %353 = vmatpush.bf16.msra.mxu2 %v306_v52 }
 0x288   :  { %832 = vmatmul.msk.bf16.vlgmr.msra.gmra.mxu2 %vm206_vm5, %v303_v53 }
 0x298   :  { %833 = vmatmul.msk.bf16.gmra.mxu2 %vm206_vm5, %v304_v57 }
 0x2a8   :  { %834 = vmatmul.msk.bf16.gmra.mxu2 %vm206_vm5, %v305_v61 }
 0x2aa   :  { %v310_v4 = vpop.permute.xlu1 %309 }
 0x30b   :  { %v355_v3 = vpop.f32.mrf.mxu2 }
 0x30c   :  { %v1046_v7 = vadd.f32 %v355_v3, %v310_v4 }
 0x30e   :  { %v427_v9 = vadd.f32 %v413_v8, %v1046_v7 }
 0x310   :  { %v429_v12 = vmul.f32 0.5, %v427_v9 }
 0x312   :  { %887 = vtanh.f32 %v429_v12 }
 0x313   :  { %v357_v10 = vpop.f32.mrf.mxu2 }
 0x314   :  { %v1052_v14 = vadd.f32 %v357_v10, %v315_v62 }
 0x316   :  { %v428_v19 = vadd.f32 %v415_v15, %v1052_v14 }
 0x318   :  { %v430_v21 = vmul.f32 0.5, %v428_v19  ;;  %v888_v22 = vpop.eup %887 }
 0x319   :  { %v433_v26 = vadd.f32 1.0, %v888_v22 }
 0x31a   :  { %889 = vtanh.f32 %v430_v21 }
 0x31b   :  { %v360_v17 = vpop.f32.mrf.mxu2  ;;  %v435_v32 = vmul.f32 0.5, %v433_v26 }
 0x31c   :  { %v1060_v27 = vadd.f32 %v360_v17, %v320_v2 }
 0x31d   :  { %v447_v40 = vmul.f32 %v435_v32, %v423_v31 }
 0x31e   :  { %v437_v33 = vadd.f32 %v418_v29, %v1060_v27 }
 0x320   :  { %v890_v34 = vpop.eup %889  ;;  %v439_v41 = vmul.f32 0.5, %v437_v33 }
 0x321   :  { %v434_v42 = vadd.f32 1.0, %v890_v34 }
 0x322   :  { %891 = vtanh.f32 %v439_v41 }
 0x323   :  { %v362_v25 = vpop.f32.mrf.mxu2  ;;  %v436_v50 = vmul.f32 0.5, %v434_v42 }
 0x324   :  { %v1062_v28 = vadd.f32 %v362_v25, %v325_v11 }
 0x325   :  { %v448_v53 = vmul.f32 %v436_v50, %v425_v49 }
 0x326   :  { %v438_v36 = vadd.f32 %v420_v30, %v1062_v28 }
 0x328   :  { %v440_v47 = vmul.f32 0.5, %v438_v36  ;;  %v892_v55 = vpop.eup %891 }
 0x329   :  { %v443_v59 = vadd.f32 1.0, %v892_v55 }
 0x32a   :  { %893 = vtanh.f32 %v440_v47 }
 0x32b   :  { %v365_v38 = vpop.f32.mrf.mxu2  ;;  %v445_v62 = vmul.f32 0.5, %v443_v59 }
 0x32c   :  { %v1071_v43 = vadd.f32 %v365_v38, %v330_v37 }
 0x32e   :  { %v449_v48 = vadd.f32 %v447_v40, %v1071_v43 }
 0x330   :  { %895 = vtanh.f32 %v449_v48  ;;  %v894_v57 = vpop.eup %893 }
 0x331   :  { %v444_v60 = vadd.f32 1.0, %v894_v57 }
 0x333   :  { %v367_v52 = vpop.f32.mrf.mxu2  ;;  %v446_v1 = vmul.f32 0.5, %v444_v60 }
 0x334   :  { %v1075_v54 = vadd.f32 %v367_v52, %v335_v51 }
 0x336   :  { %v450_v56 = vadd.f32 %v448_v53, %v1075_v54  ;;  %v896_v58 = vpop.eup %895 }
 0x337   :  { %v453_v61 = vsub.f32 0.0, %v896_v58 }
 0x338   :  { %897 = vtanh.f32 %v450_v56 }
 0x339   :  { %v455_v3 = vmul.f32 %v453_v61, %v445_v62 }
 0x33b   :  { %v457_v6 = vadd.f32 %v896_v58, %v455_v3 }
 0x33e   :  { %v898_v63 = vpop.eup %897 }
 0x33f   :  { %v454_v2 = vsub.f32 0.0, %v898_v63 }
 0x341   :  { %v456_v4 = vmul.f32 %v454_v2, %v446_v1 }
 0x343   :  { %v458_v8 = vadd.f32 %v898_v63, %v456_v4 }
 0x345   :  { %v459_v9 = vpack.c.bf16 %v458_v8, %v457_v6 }
 0x347   :  { %467 = vmatpush.bf16.msrb.mxu1 %v459_v9 }
 0x34a   :  { %838 = vmatmul.msk.bf16.vlgmr.msrb.gmra.mxu1 %vm206_vm5, %v1018_v18 }
 0x35a   :  { %839 = vmatmul.msk.bf16.gmra.mxu1 %vm206_vm5, %v1024_v39 }
 0x36a   :  { %840 = vmatmul.msk.bf16.gmra.mxu1 %vm206_vm5, %v1028_v44 }
 0x3c7   :  { %v469_v10 = vpop.f32.mrf.mxu1 }
 0x3c8   :  { %v470_v11 = vadd.f32 %v469_v10, %v1042_v0 }
 0x3ca   :  { %486 = vrot.lane.b32.xlu2 %v470_v11, %s967_s23 }
 0x3cf   :  { %v471_v12 = vpop.f32.mrf.mxu1 }
 0x3d0   :  { %v472_v15 = vadd.f32 %v471_v12, %v1044_v5 }
 0x3d2   :  { %488 = vrot.lane.b32.xlu0 %v472_v15, %s967_s23 }
 0x3d7   :  { %v474_v16 = vpop.f32.mrf.mxu1 }
 0x3d8   :  { %v475_v42 = vadd.f32 %v474_v16, %v1050_v13 }
 0x3df   :  { %v476_v17 = vpop.f32.mrf.mxu1 }
 0x3e0   :  { %v477_v53 = vadd.f32 %v476_v17, %v1056_v20 }
 0x3e7   :  { %v479_v19 = vpop.f32.mrf.mxu1 }
 0x3e8   :  { %v480_v21 = vadd.f32 %v479_v19, %v1058_v23 }
 0x3ea   :  { %522 = vrot.lane.b32.xlu2 %v480_v21, %s967_s23 }
 0x3ef   :  { %v481_v22 = vpop.f32.mrf.mxu1 }
 0x3f0   :  { %v482_v24 = vadd.f32 %v481_v22, %v1068_v35 }
 0x3f2   :  { %524 = vrot.lane.b32.xlu0 %v482_v24, %s967_s23 }
 0x424   :  { %v487_v25 = vpop.permute.xlu2 %486 }
 0x425   :  { %v492_v26 = vadd.f32 %v487_v25, %v1046_v7 }
 0x427   :  { %v494_v29 = vmul.f32 0.5, %v492_v26 }
 0x429   :  { %899 = vtanh.f32 %v494_v29 }
 0x42f   :  { %v900_v30 = vpop.eup %899 }
 0x430   :  { %v498_v31 = vadd.f32 1.0, %v900_v30 }
 0x432   :  { %v500_v32 = vmul.f32 0.5, %v498_v31 }
 0x444   :  { %v523_v33 = vpop.permute.xlu2 %522  ;;  %v489_v37 = vpop.permute.xlu0 %488 }
 0x445   :  { %v528_v34 = vmul.f32 %v523_v33, %v500_v32  ;;  %v493_v38 = vadd.f32 %v489_v37, %v1052_v14 }
 0x447   :  { %v530_v36 = vadd.f32 %v528_v34, %v1071_v43  ;;  %v495_v41 = vmul.f32 0.5, %v493_v38 }
 0x449   :  { %901 = vtanh.f32 %v530_v36 }
 0x44a   :  { %903 = vtanh.f32 %v495_v41 }
 0x44f   :  { %v902_v40 = vpop.eup %901 }
 0x450   :  { %536 = vrot.lane.b32.xlu2 %v902_v40, %s968_s24  ;;  %v904_v46 = vpop.eup %903 }
 0x451   :  { %v499_v47 = vadd.f32 1.0, %v904_v46 }
 0x453   :  { %v501_v48 = vmul.f32 0.5, %v499_v47 }
 0x458   :  { %504 = vrot.lane.b32.xlu2 %v475_v42, %s967_s23 }
 0x464   :  { %v525_v49 = vpop.permute.xlu0 %524 }
 0x465   :  { %v529_v50 = vmul.f32 %v525_v49, %v501_v48 }
 0x467   :  { %v531_v51 = vadd.f32 %v529_v50, %v1075_v54 }
 0x469   :  { %905 = vtanh.f32 %v531_v51 }
 0x46f   :  { %v906_v52 = vpop.eup %905 }
 0x470   :  { %538 = vrot.lane.b32.xlu0 %v906_v52, %s968_s24 }
 0x478   :  { %506 = vrot.lane.b32.xlu0 %v477_v53, %s967_s23 }
 0x4aa   :  { %v537_v55 = vpop.permute.xlu2 %536 }
 0x4ab   :  { %v542_v56 = vsub.f32 %v457_v6, %v537_v55 }
 0x4ad   :  { %546 = vrot.lane.b32.xlu2 %v542_v56, %s967_s23 }
 0x4b2   :  { %v505_v59 = vpop.permute.xlu2 %504 }
 0x4b3   :  { %v510_v61 = vadd.f32 %v505_v59, %v1060_v27 }
 0x4b5   :  { %v512_v63 = vmul.f32 0.5, %v510_v61 }
 0x4b7   :  { %907 = vtanh.f32 %v512_v63 }
 0x4bd   :  { %v908_v2 = vpop.eup %907 }
 0x4be   :  { %v516_v4 = vadd.f32 1.0, %v908_v2 }
 0x4c0   :  { %v518_v10 = vmul.f32 0.5, %v516_v4 }
 0x4e2   :  { %v539_v57 = vpop.permute.xlu0 %538 }
 0x4e3   :  { %v543_v58 = vsub.f32 %v458_v8, %v539_v57 }
 0x4e5   :  { %548 = vrot.lane.b32.xlu0 %v543_v58, %s967_s23 }
 0x4ea   :  { %v507_v60 = vpop.permute.xlu0 %506 }
 0x4eb   :  { %v511_v62 = vadd.f32 %v507_v60, %v1062_v28 }
 0x4ed   :  { %v513_v1 = vmul.f32 0.5, %v511_v62 }
 0x4ef   :  { %909 = vtanh.f32 %v513_v1 }
 0x4f5   :  { %v910_v3 = vpop.eup %909 }
 0x4f6   :  { %v517_v6 = vadd.f32 1.0, %v910_v3 }
 0x4f8   :  { %v519_v8 = vmul.f32 0.5, %v517_v6 }
 0x507   :  { %v547_v9 = vpop.permute.xlu2 %546 }
 0x508   :  { %v552_v11 = vmul.f32 %v547_v9, %v518_v10 }
 0x50a   :  { %v554_v16 = vadd.f32 %v902_v40, %v552_v11 }
 0x557   :  { %v549_v12 = vpop.permute.xlu0 %548 }
 0x558   :  { %v553_v15 = vmul.f32 %v549_v12, %v519_v8 }
 0x55a   :  { %v555_v17 = vadd.f32 %v906_v52, %v553_v15 }
 0x55c   :  { %v556_v19 = vpack.c.bf16 %v555_v17, %v554_v16 }
 0x55e   :  { %558 = vrot.lane.b32.xlu2 %v556_v19, %s968_s24 }
 0x5b8   :  { %v559_v21 = vpop.permute.xlu2 %558 }
 0x5b9   :  { %568 = vmatpush.bf16.msrb.mxu0 %v559_v21 }
 0x5bc   :  { %841 = vmatmul.msk.bf16.vlgmr.msrb.gmra.mxu0 %vm206_vm5, %v1018_v18 }
 0x5cc   :  { %842 = vmatmul.msk.bf16.gmra.mxu0 %vm206_vm5, %v1024_v39 }
 0x5dc   :  { %843 = vmatmul.msk.bf16.gmra.mxu0 %vm206_vm5, %v1028_v44 }
 0x639   :  { %v570_v22 = vpop.f32.mrf.mxu0 }
 0x63a   :  { %v571_v24 = vadd.f32 %v570_v22, %v1042_v0 }
 0x63c   :  { %587 = vrot.lane.b32.xlu0 %v571_v24, %s969_s25 }
 0x641   :  { %v572_v25 = vpop.f32.mrf.mxu0 }
 0x642   :  { %v573_v26 = vadd.f32 %v572_v25, %v1044_v5 }
 0x644   :  { %589 = vrot.lane.b32.xlu2 %v573_v26, %s969_s25 }
 0x649   :  { %v575_v29 = vpop.f32.mrf.mxu0 }
 0x64a   :  { %v576_v36 = vadd.f32 %v575_v29, %v1050_v13 }
 0x651   :  { %v577_v30 = vpop.f32.mrf.mxu0 }
 0x652   :  { %v578_v61 = vadd.f32 %v577_v30, %v1056_v20 }
 0x659   :  { %v580_v31 = vpop.f32.mrf.mxu0 }
 0x65a   :  { %v581_v32 = vadd.f32 %v580_v31, %v1058_v23 }
 0x65c   :  { %623 = vrot.lane.b32.xlu1 %v581_v32, %s969_s25 }
 0x661   :  { %v582_v33 = vpop.f32.mrf.mxu0 }
 0x662   :  { %v583_v34 = vadd.f32 %v582_v33, %v1068_v35 }
 0x664   :  { %625 = vrot.lane.b32.xlu0 %v583_v34, %s969_s25 }
 0x66c   :  { %605 = vrot.lane.b32.xlu0 %v576_v36, %s969_s25 }
 0x69e   :  { %v590_v41 = vpop.permute.xlu2 %589 }
 0x69f   :  { %v594_v42 = vadd.f32 %v590_v41, %v1052_v14 }
 0x6a1   :  { %v596_v46 = vmul.f32 0.5, %v594_v42 }
 0x6ae   :  { %v588_v37 = vpop.permute.xlu0 %587 }
 0x6af   :  { %v593_v38 = vadd.f32 %v588_v37, %v1046_v7 }
 0x6b1   :  { %v595_v40 = vmul.f32 0.5, %v593_v38 }
 0x6b3   :  { %911 = vtanh.f32 %v595_v40 }
 0x6b4   :  { %913 = vtanh.f32 %v596_v46 }
 0x6b9   :  { %v912_v47 = vpop.eup %911 }
 0x6ba   :  { %v599_v48 = vadd.f32 1.0, %v912_v47  ;;  %v914_v50 = vpop.eup %913 }
 0x6bb   :  { %v600_v55 = vadd.f32 1.0, %v914_v50 }
 0x6bc   :  { %v601_v49 = vmul.f32 0.5, %v599_v48 }
 0x6bd   :  { %v602_v56 = vmul.f32 0.5, %v600_v55 }
 0x6ce   :  { %v624_v51 = vpop.permute.xlu1 %623 }
 0x6cf   :  { %v629_v52 = vmul.f32 %v624_v51, %v601_v49 }
 0x6d1   :  { %v631_v53 = vadd.f32 %v629_v52, %v1071_v43 }
 0x6d3   :  { %915 = vtanh.f32 %v631_v53 }
 0x6d6   :  { %v626_v57 = vpop.permute.xlu0 %625 }
 0x6d7   :  { %v630_v58 = vmul.f32 %v626_v57, %v602_v56 }
 0x6d9   :  { %v916_v59 = vpop.eup %915  ;;  %v632_v60 = vadd.f32 %v630_v58, %v1075_v54 }
 0x6da   :  { %637 = vrot.lane.b32.xlu2 %v916_v59, %s968_s24 }
 0x6db   :  { %917 = vtanh.f32 %v632_v60 }
 0x6de   :  { %v606_v4 = vpop.permute.xlu0 %605 }
 0x6df   :  { %v611_v9 = vadd.f32 %v606_v4, %v1060_v27 }
 0x6e1   :  { %v918_v62 = vpop.eup %917  ;;  %v613_v11 = vmul.f32 0.5, %v611_v9 }
 0x6e2   :  { %607 = vrot.lane.b32.xlu2 %v578_v61, %s969_s25  ;;  %639 = vrot.lane.b32.xlu1 %v918_v62, %s968_s24 }
 0x6e3   :  { %919 = vtanh.f32 %v613_v11 }
 0x6e9   :  { %v920_v12 = vpop.eup %919 }
 0x6ea   :  { %v617_v19 = vadd.f32 1.0, %v920_v12 }
 0x6ec   :  { %v619_v22 = vmul.f32 0.5, %v617_v19 }
 0x734   :  { %v638_v63 = vpop.permute.xlu2 %637 }
 0x735   :  { %v643_v1 = vsub.f32 %v554_v16, %v638_v63 }
 0x737   :  { %647 = vrot.lane.b32.xlu1 %v643_v1, %s967_s23 }
 0x73c   :  { %v608_v6 = vpop.permute.xlu2 %607 }
 0x73d   :  { %v612_v10 = vadd.f32 %v608_v6, %v1062_v28 }
 0x73f   :  { %v614_v8 = vmul.f32 0.5, %v612_v10 }
 0x741   :  { %921 = vtanh.f32 %v614_v8 }
 0x747   :  { %v922_v15 = vpop.eup %921 }
 0x748   :  { %v618_v16 = vadd.f32 1.0, %v922_v15 }
 0x754   :  { %v640_v2 = vpop.permute.xlu1 %639 }
 0x755   :  { %v644_v3 = vsub.f32 %v555_v17, %v640_v2  ;;  %v620_v17 = vmul.f32 0.5, %v618_v16 }
 0x757   :  { %649 = vrot.lane.b32.xlu0 %v644_v3, %s967_s23 }
 0x7a9   :  { %v648_v21 = vpop.permute.xlu1 %647 }
 0x7aa   :  { %v653_v24 = vmul.f32 %v648_v21, %v619_v22 }
 0x7ac   :  { %v655_v29 = vadd.f32 %v916_v59, %v653_v24 }
 0x7c9   :  { %v650_v25 = vpop.permute.xlu0 %649 }
 0x7ca   :  { %v654_v26 = vmul.f32 %v650_v25, %v620_v17 }
 0x7cc   :  { %v656_v30 = vadd.f32 %v918_v62, %v654_v26 }
 0x7ce   :  { %v657_v31 = vpack.c.bf16 %v656_v30, %v655_v29 }
 0x7d0   :  { %659 = vrot.lane.b32.xlu2 %v657_v31, %s970_s26 }
 0x82a   :  { %v660_v32 = vpop.permute.xlu2 %659 }
 0x82b   :  { %669 = vmatpush.bf16.msrb.mxu2 %v660_v32 }
 0x82e   :  { %844 = vmatmul.msk.bf16.vlgmr.msrb.gmra.mxu2 %vm206_vm5, %v1018_v18 }
 0x83e   :  { %845 = vmatmul.msk.bf16.gmra.mxu2 %vm206_vm5, %v1024_v39 }
 0x84e   :  { %846 = vmatmul.msk.bf16.gmra.mxu2 %vm206_vm5, %v1028_v44 }
 0x8b1   :  { %v671_v33 = vpop.f32.mrf.mxu2 }
 0x8b2   :  { %v672_v34 = vadd.f32 %v671_v33, %v1042_v0 }
 0x8b4   :  { %688 = vrot.lane.b32.xlu1 %v672_v34, %s971_s27  ;;  %v50_v34 = vld [vmem:[#allocation2 + $0x98] sm:$0x3] }
 0x8b9   :  { %v673_v36 = vpop.f32.mrf.mxu2 }
 0x8ba   :  { %v674_v37 = vadd.f32 %v673_v36, %v1044_v5 }
 0x8bc   :  { %690 = vrot.lane.b32.xlu0 %v674_v37, %s971_s27 }
 0x8c1   :  { %v676_v38 = vpop.f32.mrf.mxu2 }
 0x8c2   :  { %v677_v0 = vadd.f32 %v676_v38, %v1050_v13  ;;  %v785_v38 = vpack.c.bf16 %v50_v34, %v50_v34 }
 0x8c9   :  { %v678_v40 = vpop.f32.mrf.mxu2 }
 0x8d1   :  { %v681_v18 = vpop.f32.mrf.mxu2 }
 0x8d2   :  { %v682_v41 = vadd.f32 %v681_v18, %v1058_v23 }
 0x8d4   :  { %724 = vrot.lane.b32.xlu2 %v682_v41, %s971_s27 }
 0x8d9   :  { %v683_v39 = vpop.f32.mrf.mxu2 }
 0x8da   :  { %v684_v44 = vadd.f32 %v683_v39, %v1068_v35 }
 0x8dc   :  { %726 = vrot.lane.b32.xlu1 %v684_v44, %s971_s27 }
 0x8e4   :  { %706 = vrot.lane.b32.xlu1 %v677_v0, %s971_s27 }
 0x926   :  { %v689_v42 = vpop.permute.xlu1 %688 }
 0x927   :  { %v694_v5 = vadd.f32 %v689_v42, %v1046_v7  ;;  %v679_v7 = vadd.f32 %v678_v40, %v1056_v20 }
 0x929   :  { %v696_v46 = vmul.f32 0.5, %v694_v5 }
 0x92b   :  { %923 = vtanh.f32 %v696_v46 }
 0x92e   :  { %v725_v23 = vpop.permute.xlu2 %724  ;;  %v691_v50 = vpop.permute.xlu0 %690 }
 0x92f   :  { %v695_v35 = vadd.f32 %v691_v50, %v1052_v14 }
 0x931   :  { %v924_v47 = vpop.eup %923  ;;  %v697_v53 = vmul.f32 0.5, %v695_v35 }
 0x932   :  { %v700_v48 = vadd.f32 1.0, %v924_v47 }
 0x934   :  { %v702_v49 = vmul.f32 0.5, %v700_v48 }
 0x936   :  { %v730_v51 = vmul.f32 %v725_v23, %v702_v49 }
 0x938   :  { %v732_v52 = vadd.f32 %v730_v51, %v1071_v43 }
 0x93a   :  { %925 = vtanh.f32 %v732_v52 }
 0x93b   :  { %927 = vtanh.f32 %v697_v53 }
 0x940   :  { %v926_v13 = vpop.eup %925 }
 0x941   :  { %738 = vrot.lane.b32.xlu0 %v926_v13, %s968_s24  ;;  %v928_v55 = vpop.eup %927 }
 0x942   :  { %v701_v56 = vadd.f32 1.0, %v928_v55 }
 0x944   :  { %v703_v57 = vmul.f32 0.5, %v701_v56 }
 0x949   :  { %708 = vrot.lane.b32.xlu0 %v679_v7, %s971_s27 }
 0x94e   :  { %v727_v58 = vpop.permute.xlu1 %726 }
 0x94f   :  { %v731_v59 = vmul.f32 %v727_v58, %v703_v57 }
 0x951   :  { %v733_v60 = vadd.f32 %v731_v59, %v1075_v54 }
 0x953   :  { %929 = vtanh.f32 %v733_v60 }
 0x956   :  { %v707_v20 = vpop.permute.xlu1 %706 }
 0x957   :  { %v712_v2 = vadd.f32 %v707_v20, %v1060_v27  ;;  %v973_v27 = vmov 2  }
 0x958   :  { %882 = vset.pattern.permute.xlu2 %v973_v27 }
 0x959   :  { %v930_v43 = vpop.eup %929  ;;  %v714_v4 = vmul.f32 0.5, %v712_v2 }
 0x95a   :  { %740 = vrot.lane.b32.xlu2 %v930_v43, %s968_s24 }
 0x95b   :  { %931 = vtanh.f32 %v714_v4 }
 0x961   :  { %v932_v6 = vpop.eup %931 }
 0x962   :  { %v718_v10 = vadd.f32 1.0, %v932_v6 }
 0x964   :  { %v720_v12 = vmul.f32 0.5, %v718_v10 }
 0x9b3   :  { %v739_v14 = vpop.permute.xlu0 %738 }
 0x9b4   :  { %v744_v61 = vsub.f32 %v655_v29, %v739_v14  ;;  %v741_v62 = vpop.permute.xlu2 %740  ;;  %v974_v29 = vmov 3  }
 0x9b5   :  { %v745_v63 = vsub.f32 %v656_v30, %v741_v62  ;;  %883 = vset.pattern.permute.xlu1 %v974_v29  ;;  %884 = vset.pattern.permute.xlu0 %v974_v29 }
 0x9b6   :  { %748 = vrot.lane.b32.xlu2 %v744_v61, %s967_s23 }
 0x9b7   :  { %750 = vrot.lane.b32.xlu1 %v745_v63, %s967_s23 }
 0x9bb   :  { %v709_v1 = vpop.permute.xlu0 %708 }
 0x9bc   :  { %v713_v3 = vadd.f32 %v709_v1, %v1062_v28  ;;  %v49_v28 = vld [vmem:[#allocation2 + $0x90] sm:$0xff] }
 0x9bd   :  { %v758_v26 = vpack.c.bf16 %v49_v28, %v49_v28 }
 0x9be   :  { %v715_v54 = vmul.f32 0.5, %v713_v3  ;;  %761 = vperm.xlu2 %882, %v1032_v45  }
 0x9bf   :  { %788 = vperm.xlu1 %883, %v1032_v45  }
 0x9c0   :  { %933 = vtanh.f32 %v715_v54 }
 0x9c6   :  { %v934_v9 = vpop.eup %933 }
 0x9c7   :  { %v719_v11 = vadd.f32 1.0, %v934_v9 }
 0x9c9   :  { %v721_v19 = vmul.f32 0.5, %v719_v11 }
 0xa10   :  { %v749_v8 = vpop.permute.xlu2 %748 }
 0xa11   :  { %v754_v15 = vmul.f32 %v749_v8, %v720_v12 }
 0xa13   :  { %v756_v22 = vadd.f32 %v926_v13, %v754_v15 }
 0xa18   :  { %v762_v30 = vpop.permute.xlu2 %761 }
 0xa29   :  { %v751_v16 = vpop.permute.xlu1 %750 }
 0xa2a   :  { %v755_v21 = vmul.f32 %v751_v16, %v721_v19 }
 0xa2c   :  { %v757_v24 = vadd.f32 %v930_v43, %v755_v21 }
 0xa2e   :  { %v759_v17 = vpack.c.bf16 %v757_v24, %v756_v22 }
 0xa30   :  { %765 = vrot.lane.b32.xlu0 %v759_v17, %s972_s28 }
 0xa31   :  { %v789_v18 = vpop.permute.xlu1 %788 }
 0xaa2   :  { %v766_v25 = vpop.permute.xlu0 %765 }
 0xaa3   :  { %778 = vmatpush.bf16.msrb.mxu3 %v766_v25 }
 0xaa6   :  { %847 = vmatmul.msk.bf16.vlgmr.msrb.gmra.mxu3 %vm206_vm5, %v758_v26 }
 0xb29   :  { %v780_v31 = vpop.f32.mrf.mxu3 }
 0xb2a   :  { %v781_v32 = vadd.f32 %v780_v31, %v762_v30 }
 0xb2c   :  { %v784_v33 = vmax.f32 %v781_v32, 0.0 }
 0xb2e   :  { %v786_v36 = vpack.c.bf16 %v784_v33, %v784_v33 }
 0xb30   :  { %v795_v37 = vsel %vm191_vm3, %v786_v36, 0 }
 0xb31   :  { %v782_v40 = vpop.f32.mrf.mxu3  ;;  %804 = vmatpush.bf16.msra.mxu3 %v795_v37 }
 0xb34   :  { %848 = vmatmul.msk.bf16.vlgmr.msra.gmra.mxu3 %vm203_vm4, %v785_v38 }
 0xbb7   :  { %v806_v41 = vpop.f32.mrf.mxu3 }
 0xbb8   :  { %v807_v39 = vadd.f32 %v806_v41, %v789_v18 }
 0xbba   :  { %811 = vst.msk [vmem:[%s1173_s2] sm:$0x3] %vm810_vm7, %v807_v39 }
 0xbbf   :  { %v808_v45 = vpop.f32.mrf.mxu3 }
 0xbc0   :  { %816 = vsyncpa [#allocation3], 1 }

</bundles_post_ra>
